<compile_context>
chip_gen: v6e
topology: v6e:2x2x1
jax: 0.10.0
libtpu: 0.0.40
codegen_flags: <defaults>
</compile_context>

<pallas_src>
import jax
import jax.numpy as jnp
from jax import lax
from jax.experimental import pallas as pl
from jax.experimental.pallas import tpu as pltpu

TAU = 24          # reference TP default: def TP(q, tau=24, beta=0.5)
BETA = 0.5
BIG = 1.0e30      # finite stand-in for the +/-inf and 10000.0 pads of TP
VMEM_LIMIT = 48 * 1024 * 1024


# ----------------------------------------------------------------------------
# Kernel 1: fused ANN linear + GRU input projection (row-tiled, bf16 on MXU).
#   feat = x @ W0 + b0            (ANN, n_ANNlayers=1 -> just fc0)
#   GI   = feat @ Wih + b_ih      (input half of the GRU gates, [r|z|n])
# ----------------------------------------------------------------------------
def ann_gi_kernel(x_ref, w0_ref, b0_ref, wih_ref, bih_ref, gi_ref):
    feat = jnp.dot(x_ref[...], w0_ref[...],
                   preferred_element_type=jnp.float32) + b0_ref[...]
    gi_ref[...] = (jnp.dot(feat.astype(jnp.bfloat16), wih_ref[...],
                           preferred_element_type=jnp.float32) + bih_ref[...])


def ann_gi(x2d, w0, b0, wih, bih):
    M, K = x2d.shape
    R = w0.shape[1]
    G = wih.shape[1]                           # 3 * hidden
    tile_m = 512 if M >= 512 else M            # multiple of 8 or the full dim
    grid = (pl.cdiv(M, tile_m),)
    return pl.pallas_call(
        ann_gi_kernel,
        out_shape=jax.ShapeDtypeStruct((M, G), jnp.float32),
        grid=grid,
        in_specs=[pl.BlockSpec((tile_m, K), lambda i: (i, 0)),
                  pl.BlockSpec((K, R), lambda i: (0, 0)),
                  pl.BlockSpec((1, R), lambda i: (0, 0)),
                  pl.BlockSpec((R, G), lambda i: (0, 0)),
                  pl.BlockSpec((1, G), lambda i: (0, 0))],
        out_specs=pl.BlockSpec((tile_m, G), lambda i: (i, 0)),
        compiler_params=pltpu.CompilerParams(
            dimension_semantics=("parallel",),
            vmem_limit_bytes=VMEM_LIMIT),
    )(x2d.astype(jnp.bfloat16), w0.astype(jnp.bfloat16), b0,
      wih.astype(jnp.bfloat16), bih)


# ----------------------------------------------------------------------------
# Kernel 2: single-layer GRU recurrence (h0 = 0) fused with q = Linear(h, 1).
# The input projection GI is precomputed (kernel 1); the loop only does
# gh = h @ Whh per gate.  Time is chunked over the grid; h is carried in a
# VMEM scratch; q is written once per chunk from a buffered h chunk.
# ----------------------------------------------------------------------------
def gru_q_kernel(gi_r_ref, gi_z_ref, gi_n_ref,
                 whh_r_ref, whh_z_ref, whh_n_ref,
                 bhh_r_ref, bhh_z_ref, bhh_n_ref,
                 wq_ref, bq_ref,
                 q_ref, h_buf, h_carry):
    @pl.when(pl.program_id(0) == 0)
    def _():
        h_carry[...] = jnp.zeros_like(h_carry)

    whh_r = whh_r_ref[...]
    whh_z = whh_z_ref[...]
    whh_n = whh_n_ref[...]
    bhh_r = bhh_r_ref[...]
    bhh_z = bhh_z_ref[...]
    bhh_n = bhh_n_ref[...]
    t_chunk = gi_r_ref.shape[0]

    def step(t, h):
        gh_r = jnp.dot(h, whh_r, preferred_element_type=jnp.float32) + bhh_r
        gh_z = jnp.dot(h, whh_z, preferred_element_type=jnp.float32) + bhh_z
        gh_n = jnp.dot(h, whh_n, preferred_element_type=jnp.float32) + bhh_n
        r = jax.nn.sigmoid(gi_r_ref[t] + gh_r)
        z = jax.nn.sigmoid(gi_z_ref[t] + gh_z)
        n = jnp.tanh(gi_n_ref[t] + r * gh_n)
        h_new = (1.0 - z) * n + z * h
        h_buf[t] = h_new
        return h_new

    h_carry[...] = lax.fori_loop(0, t_chunk, step, h_carry[...])

    # q head over the whole chunk: one reduce + one store (no per-step stores)
    wq = wq_ref[...]                                         # (1, H)
    q_ref[...] = jnp.sum(h_buf[...] * wq[None, :, :], axis=-1) + bq_ref[0]


def gru_q(gi_r, gi_z, gi_n, whh_r, whh_z, whh_n, bhh_r, bhh_z, bhh_n, wq, bq):
    T, B, H = gi_r.shape
    t_chunk = 128 if T >= 128 else T
    grid = (pl.cdiv(T, t_chunk),)
    gi_spec = pl.BlockSpec((t_chunk, B, H), lambda c: (c, 0, 0))
    w_spec = pl.BlockSpec((H, H), lambda c: (0, 0))
    b_spec = pl.BlockSpec((1, H), lambda c: (0, 0))
    return pl.pallas_call(
        gru_q_kernel,
        out_shape=jax.ShapeDtypeStruct((T, B), jnp.float32),
        grid=grid,
        in_specs=[gi_spec, gi_spec, gi_spec,
                  w_spec, w_spec, w_spec,
                  b_spec, b_spec, b_spec,
                  b_spec,                                    # wq (1, H)
                  pl.BlockSpec(memory_space=pltpu.MemorySpace.SMEM)],  # bq
        out_specs=pl.BlockSpec((t_chunk, B), lambda c: (c, 0)),
        scratch_shapes=[pltpu.VMEM((t_chunk, B, H), jnp.float32),  # h chunk
                        pltpu.VMEM((B, H), jnp.float32)],          # carried h
        compiler_params=pltpu.CompilerParams(
            dimension_semantics=("arbitrary",),
            vmem_limit_bytes=VMEM_LIMIT),
    )(gi_r, gi_z, gi_n, whh_r, whh_z, whh_n, bhh_r, bhh_z, bhh_n, wq, bq)


# ----------------------------------------------------------------------------
# Kernel 3: TP (subjectively-inspired temporal pooling) + per-sequence mean.
#   l[t] = min of q over trailing window [t-tau+1, t]              ("memory")
#   m[t] = softmin-weighted mean of q over forward window [t, t+tau-1]
#          restricted to the valid length                          ("current")
#   score = mean_t( beta*m + (1-beta)*l ) over the first L frames
# Implemented as TAU static shifted slices of a padded q row (O(B*T*TAU)).
# ----------------------------------------------------------------------------
def tp_score_kernel(qpad_ref, len_ref, score_ref):
    qpad = qpad_ref[...]                               # (B, T + 2*(TAU-1))
    B, Tp = qpad.shape
    P = TAU - 1
    T = Tp - 2 * P
    lens_i = len_ref[...]                              # (B, 1) int32
    lens_f = lens_i.astype(jnp.float32)

    col = lax.broadcasted_iota(jnp.int32, (B, Tp), 1)
    valid_src = (col >= P) & (col < P + lens_i)        # real, in-length frames

    # Softmin stabilisation: subtract the per-row min over valid frames.  The
    # shared factor exp(q_min) cancels exactly in m = num / den, matching the
    # reference (which relies on exp(-10000) == 0) but overflow-safe.
    q_for_min = jnp.where(valid_src, qpad, BIG)
    q_min = jnp.min(q_for_min, axis=-1, keepdims=True)            # (B, 1)
    e_pad = jnp.where(valid_src, jnp.exp(-(qpad - q_min)), 0.0)   # (B, Tp)
    w_pad = qpad * e_pad                               # 0 at pads / >= length

    l = jnp.full((B, T), BIG, jnp.float32)
    num = jnp.zeros((B, T), jnp.float32)
    den = jnp.zeros((B, T), jnp.float32)
    for d in range(TAU):                               # TAU shifted windows
        l = jnp.minimum(l, q_for_min[:, P - d:P - d + T])   # q[t-d], d<=t
        num = num + w_pad[:, P + d:P + d + T]               # q[t+d]*e[t+d]
        den = den + e_pad[:, P + d:P + d + T]

    t_idx = lax.broadcasted_iota(jnp.int32, (B, T), 1)
    valid_t = t_idx < lens_i                           # (B, T)
    m = num / jnp.where(valid_t, den, 1.0)
    combined = BETA * m + (1.0 - BETA) * l
    combined = jnp.where(valid_t, combined, 0.0)
    score_ref[...] = jnp.sum(combined, axis=-1, keepdims=True) / lens_f


def tp_pool(q_bt, lens_i32):
    B, T = q_bt.shape
    P = TAU - 1
    q_pad = jnp.pad(q_bt, ((0, 0), (P, P)), constant_values=BIG)  # glue pad
    Tp = T + 2 * P
    return pl.pallas_call(
        tp_score_kernel,
        out_shape=jax.ShapeDtypeStruct((B, 1), jnp.float32),
        grid=(1,),
        in_specs=[pl.BlockSpec((B, Tp), lambda i: (0, 0)),
                  pl.BlockSpec((B, 1), lambda i: (0, 0))],
        out_specs=pl.BlockSpec((B, 1), lambda i: (0, 0)),
        compiler_params=pltpu.CompilerParams(
            dimension_semantics=("arbitrary",),
            vmem_limit_bytes=VMEM_LIMIT),
    )(q_pad, lens_i32)


# ----------------------------------------------------------------------------
# Parameter init (deterministic, PyTorch-style uniform(-1/sqrt(fan_in), +))
# ----------------------------------------------------------------------------
def init_params(input_size, reduced, hidden, seed=42):
    ks = jax.random.split(jax.random.PRNGKey(seed), 7)
    s0 = 1.0 / float(jnp.sqrt(input_size))
    sh = 1.0 / float(jnp.sqrt(hidden))
    u = lambda k, shape, s: jax.random.uniform(k, shape, jnp.float32, -s, s)
    return dict(
        w0=u(ks[0], (input_size, reduced), s0),     # fc0 weight (in, out)
        b0=u(ks[1], (1, reduced), s0),              # fc0 bias
        wih=u(ks[2], (reduced, 3 * hidden), sh),    # GRU input weights [r|z|n]
        whh=u(ks[3], (hidden, 3 * hidden), sh),     # GRU hidden weights [r|z|n]
        bih=u(ks[4], (1, 3 * hidden), sh),
        bhh=u(ks[5], (1, 3 * hidden), sh),
        wq=u(ks[6], (1, hidden), sh),               # q head weight
        bq=jnp.zeros((1,), jnp.float32),            # q head bias (SMEM scalar)
    )


# ----------------------------------------------------------------------------
# Full VSFA forward
# ----------------------------------------------------------------------------
def vsfa_forward(x, input_length, p):
    B, T, D = x.shape
    H = p["whh"].shape[0]

    # Stage 1: ANN fc0 fused with GRU input projection (tiled bf16 matmuls)
    gi = ann_gi(x.reshape(B * T, D), p["w0"], p["b0"],
                p["wih"], p["bih"])                          # (B*T, 3H) f32

    # Glue: time-major + per-gate split so the recurrence never slices lanes.
    gi = gi.reshape(B, T, 3, H).transpose(2, 1, 0, 3)        # (3, T, B, H)
    gi_r, gi_z, gi_n = gi[0], gi[1], gi[2]
    whh, bhh = p["whh"], p["bhh"]
    whh_r, whh_z, whh_n = whh[:, :H], whh[:, H:2 * H], whh[:, 2 * H:]
    bhh_r, bhh_z, bhh_n = bhh[:, :H], bhh[:, H:2 * H], bhh[:, 2 * H:]

    # Stage 2: GRU recurrence fused with per-frame quality q = Linear(h_t, 1)
    q_tb = gru_q(gi_r, gi_z, gi_n, whh_r, whh_z, whh_n,
                 bhh_r, bhh_z, bhh_n, p["wq"], p["bq"])      # (T, B)
    q_bt = jnp.transpose(q_tb)                               # (B, T)

    # Stage 3: temporal pooling + per-sequence mean over the valid frames.
    lens_i32 = input_length.astype(jnp.int32).reshape(B, 1)
    score = tp_pool(q_bt, lens_i32)                          # (B, 1)
    return score.reshape(B)


if __name__ == "__main__":
    B, T = 2, 8
    INPUT_SIZE, REDUCED, HIDDEN = 64, 32, 32

    key = jax.random.PRNGKey(0)
    x = jax.random.normal(key, (B, T, INPUT_SIZE), jnp.float32)
    input_length = jnp.array([T, T - 2], jnp.float32)   # valid frames per video

    params = init_params(INPUT_SIZE, REDUCED, HIDDEN)
    score = jax.block_until_ready(vsfa_forward(x, input_length, params))
    assert score.shape == (B,) and bool(jnp.all(jnp.isfinite(score)))
    print("KERNEL_OK")
</pallas_src>

<mosaic_0001>
module attributes {stable_mosaic.version = 11 : i64} {
  func.func @ann_gi_kernel(%arg0: i32, %arg1: memref<16x64xbf16, #tpu.memory_space<vmem>>, %arg2: memref<64x32xbf16, #tpu.memory_space<vmem>>, %arg3: memref<1x32xf32, #tpu.memory_space<vmem>>, %arg4: memref<32x96xbf16, #tpu.memory_space<vmem>>, %arg5: memref<1x96xf32, #tpu.memory_space<vmem>>, %arg6: memref<16x96xf32, #tpu.memory_space<vmem>>) attributes {dimension_semantics = [#tpu.dimension_semantics<parallel>], iteration_bounds = array<i64: 1>, scalar_prefetch = 0 : i64, scratch_operands = 0 : i64, tpu.core_type = #tpu.core_type<tc>, window_params = [{transform_indices = @transform_0, window_bounds = array<i64: 16, 64>}, {pipeline_mode = #tpu.pipeline_mode<synchronous>, transform_indices = @transform_1, window_bounds = array<i64: 64, 32>}, {pipeline_mode = #tpu.pipeline_mode<synchronous>, transform_indices = @transform_2, window_bounds = array<i64: 1, 32>}, {pipeline_mode = #tpu.pipeline_mode<synchronous>, transform_indices = @transform_3, window_bounds = array<i64: 32, 96>}, {pipeline_mode = #tpu.pipeline_mode<synchronous>, transform_indices = @transform_4, window_bounds = array<i64: 1, 96>}, {transform_indices = @transform_5, window_bounds = array<i64: 16, 96>}]} {
    %c0 = arith.constant 0 : index
    %c0_0 = arith.constant 0 : index
    %0 = vector.load %arg1[%c0, %c0_0] : memref<16x64xbf16, #tpu.memory_space<vmem>>, vector<16x64xbf16>
    %c0_1 = arith.constant 0 : index
    %c0_2 = arith.constant 0 : index
    %1 = vector.load %arg2[%c0_1, %c0_2] : memref<64x32xbf16, #tpu.memory_space<vmem>>, vector<64x32xbf16>
    %cst = arith.constant dense<0.000000e+00> : vector<16x32xf32>
    %2 = tpu.matmul %0, %1, %cst {dimension_numbers = #tpu.dot_dimension_numbers<[1], [0], [0], [1], [0, 0, 1, 1], [], []>} : vector<16x64xbf16>, vector<64x32xbf16>, vector<16x32xf32> -> vector<16x32xf32>
    %c0_3 = arith.constant 0 : index
    %c0_4 = arith.constant 0 : index
    %3 = vector.load %arg3[%c0_3, %c0_4] : memref<1x32xf32, #tpu.memory_space<vmem>>, vector<1x32xf32>
    %4 = vector.broadcast %3 : vector<1x32xf32> to vector<16x32xf32>
    %5 = arith.addf %2, %4 : vector<16x32xf32>
    %6 = arith.truncf %5 : vector<16x32xf32> to vector<16x32xbf16>
    %c0_5 = arith.constant 0 : index
    %c0_6 = arith.constant 0 : index
    %7 = vector.load %arg4[%c0_5, %c0_6] : memref<32x96xbf16, #tpu.memory_space<vmem>>, vector<32x96xbf16>
    %cst_7 = arith.constant dense<0.000000e+00> : vector<16x96xf32>
    %8 = tpu.matmul %6, %7, %cst_7 {dimension_numbers = #tpu.dot_dimension_numbers<[1], [0], [0], [1], [0, 0, 1, 1], [], []>} : vector<16x32xbf16>, vector<32x96xbf16>, vector<16x96xf32> -> vector<16x96xf32>
    %c0_8 = arith.constant 0 : index
    %c0_9 = arith.constant 0 : index
    %9 = vector.load %arg5[%c0_8, %c0_9] : memref<1x96xf32, #tpu.memory_space<vmem>>, vector<1x96xf32>
    %10 = vector.broadcast %9 : vector<1x96xf32> to vector<16x96xf32>
    %11 = arith.addf %8, %10 : vector<16x96xf32>
    %c0_10 = arith.constant 0 : index
    %c0_11 = arith.constant 0 : index
    %12 = vector.load %arg6[%c0_10, %c0_11] : memref<16x96xf32, #tpu.memory_space<vmem>>, vector<16x96xf32>
    tpu.vector_store %arg6[%c0_10, %c0_11], %11 {strides = array<i32>} : memref<16x96xf32, #tpu.memory_space<vmem>>, vector<16x96xf32>,
    return
  }
  func.func @transform_0(%arg0: i32) -> (i32, i32) {
    %c0_i32 = arith.constant 0 : i32
    %c0_i32_0 = arith.constant 0 : i32
    return %arg0, %c0_i32 : i32, i32
  }
  func.func @transform_1(%arg0: i32) -> (i32, i32) {
    %c0_i32 = arith.constant 0 : i32
    %c0_i32_0 = arith.constant 0 : i32
    %c0_i32_1 = arith.constant 0 : i32
    return %c0_i32, %c0_i32_0 : i32, i32
  }
  func.func @transform_2(%arg0: i32) -> (i32, i32) {
    %c0_i32 = arith.constant 0 : i32
    %c0_i32_0 = arith.constant 0 : i32
    %c0_i32_1 = arith.constant 0 : i32
    return %c0_i32, %c0_i32_0 : i32, i32
  }
  func.func @transform_3(%arg0: i32) -> (i32, i32) {
    %c0_i32 = arith.constant 0 : i32
    %c0_i32_0 = arith.constant 0 : i32
    %c0_i32_1 = arith.constant 0 : i32
    return %c0_i32, %c0_i32_0 : i32, i32
  }
  func.func @transform_4(%arg0: i32) -> (i32, i32) {
    %c0_i32 = arith.constant 0 : i32
    %c0_i32_0 = arith.constant 0 : i32
    %c0_i32_1 = arith.constant 0 : i32
    return %c0_i32, %c0_i32_0 : i32, i32
  }
  func.func @transform_5(%arg0: i32) -> (i32, i32) {
    %c0_i32 = arith.constant 0 : i32
    %c0_i32_0 = arith.constant 0 : i32
    return %arg0, %c0_i32 : i32, i32
  }
}

</mosaic_0001>

<bundles_post_ra>
// kernel: tpu_custom_call.1
= control target key start
LH: loop header
LB: loop body
LE: loop exit
PB: predicated region body
PF: predicated region fallthrough
CT: control target
= control target key end

     0   :  { %v274_v1 = vmov 0.0   ;;  %vm275_vm0 = vmmov 0   ;;  %s339_s0 = inlined_call_operand.vmem [shape: bf16[16,64], index: 0, kind: input, shape index: {}]   ;;  %s340_s1 = inlined_call_operand.vmem [shape: bf16[64,32], index: 1, kind: input, shape index: {}]   ;;  %s341_s2 = inlined_call_operand.vmem [shape: f32[1,32], index: 2, kind: input, shape index: {}]   ;;  %s342_s3 = inlined_call_operand.vmem [shape: bf16[32,96], index: 3, kind: input, shape index: {}]   ;;  %s343_s4 = inlined_call_operand.vmem [shape: f32[1,96], index: 4, kind: input, shape index: {}]   ;;  %s344_s5 = inlined_call_operand.hbm [shape: f32[16,96], index: 5, kind: output, shape index: {}]  }
   0x1   :  { %v245_v0 = vld [vmem:[%s340_s1 + $0x18] sm:$0xff]   ;;  %220 = vmatprep.subr.bf16.mxu0 %v274_v1  ;;  %232 = vmatprep.subr.bf16.mxu1 %v274_v1  ;;  %v246_v2 = vld [vmem:[%s340_s1 + $0x10] sm:$0xff]   ;;  %v247_v3 = vld [vmem:[%s340_s1 + $0x8] sm:$0xff]  }
   0x2   :  { %221 = vmatpush3.bf16.msra.mxu0 %v245_v0  ;;  %228 = vmatprep.mubr.msk.bf16.mxu0 %vm275_vm0, %v274_v1 }
   0x3   :  { %222 = vmatprep.subr.bf16.mxu0 %v274_v1  ;;  %236 = vmatprep.mubr.msk.bf16.mxu1 %vm275_vm0, %v274_v1 }
   0x6   :  { %223 = vmatpush3.bf16.msra.mxu0 %v246_v2 }
   0x7   :  { %10 = vsyncpa [#allocation3], 0  ;;  %224 = vmatprep.subr.bf16.mxu0 %v274_v1  ;;  %v248_v4 = vld [vmem:[%s340_s1] sm:$0xff]   ;;  %vm68_vm1 = vcmask 523264   ;;  %v250_v6 = vld [vmem:[%s342_s3 + $0x8] sm:$0xff]   ;;  %vm137_vm2 = vcmask 261120  }
   0x8   :  { %v249_v5 = vld [vmem:[%s339_s0] sm:$0xff]   ;;  %233 = vmatpush3.bf16.msra.mxu1 %v250_v6  ;;  %vm182_vm3 = vcmask 785408  }
   0x9   :  { %234 = vmatprep.subr.bf16.mxu1 %v274_v1  ;;  %v251_v7 = vld [vmem:[%s342_s3] sm:$0xff]   ;;  %s276_s3 = smov [#allocation2]  }
   0xa   :  { %225 = vmatpush3.bf16.msra.mxu0 %v247_v3  ;;  %v201_v9 = vld [vmem:[%s341_s2] ss:$0 sm:$0xff]  ;;  %s190_s9 = sshll.u32 %s276_s3, 4  ;;  %s191_s9 = int_to_ptr.vmem [resolvable:$true] %s190_s9 }
   0xb   :  { %226 = vmatprep.subr.bf16.mxu0 %v274_v1  ;;  %v208_v16 = vld [vmem:[%s343_s4] ss:$0 sm:$0xff]  ;;  %s252_s2 = scalar_lea.vmem %s191_s9, 256  ;;  %p257_p1 = scmp.lt.s32.totalorder %s191_s9, %s191_s9 }
   0xc   :  { %235 = vmatpush3.bf16.msra.mxu1 %v251_v7  ;;  %p253_p0 = scmp.ne.s32.totalorder %s191_s9, %s252_s2  ;;  %p258_p2 = scmp.lt.s32.totalorder %s252_s2, %s252_s2 }
   0xe   :  { %227 = vmatpush3.bf16.msra.mxu0 %v248_v4  ;;  %p259_p3 = por %p258_p2, %p257_p1 }
  0x10   :  { %p260_p4 = pnand %p259_p3, %p253_p0 }
  0x11   :  { %229 = vmatmul.mubr.msk.bf16.vlgmr.msra.gmra.mxu0 %vm68_vm1, %v249_v5 }
  0xd1   :  { %v106_v8 = vpop.f32.mrf.mxu0 }
  0xd2   :  { %v107_v12 = vadd.f32 %v201_v9, %v106_v8 }
  0xd3   :  { %v230_v10 = vpop.f32.mrf.mxu0 }
  0xd5   :  { %v109_v11 = vpop.f32.mrf.mxu0 }
  0xd6   :  { %v110_v13 = vadd.f32 %v201_v9, %v109_v11 }
  0xd7   :  { %v231_v14 = vpop.f32.mrf.mxu0 }
  0xd8   :  { %v113_v15 = vpack.c.bf16 %v110_v13, %v107_v12 }
  0xda   :  { %237 = vmatmul.mubr.msk.bf16.vlgmr.msra.gmra.mxu1 %vm137_vm2, %v113_v15 }
 0x19a   :  { %v175_v17 = vpop.f32.mrf.mxu1 }
 0x19b   :  { %v176_v18 = vadd.f32 %v208_v16, %v175_v17 }
 0x19c   :  { %v238_v19 = vpop.f32.mrf.mxu1 }
 0x19d   :  { %183 = vst.msk [vmem:[#allocation2] sm:$0xff] %vm182_vm3, %v176_v18 }
 0x19e   :  { %v178_v20 = vpop.f32.mrf.mxu1 }
 0x19f   :  { %v179_v21 = vadd.f32 %v208_v16, %v178_v20 }
 0x1a0   :  { %v239_v22 = vpop.f32.mrf.mxu1 }
 0x1a1   :  { %184 = vst.msk [vmem:[#allocation2 + $0x8] sm:$0xff] %vm182_vm3, %v179_v21 }
 0x1a2   :  { %263 = shalt.err (!%p260_p4)
}
 0x1a3   :  { %s277_s4 = smov 128   ;;  %s278_s10 = smov 8  }
 0x1a4   :  { %196 = dma.vmem_to_hbm [thread:$0]  %s191_s9, 256, %s344_s5, [#allocation3], %s277_s4, %s277_s4, %s278_s10  }
 0x1a5   :  { %272 = dma.done.wait [#allocation3], 256  }
 0x1a6   :  { %273 = vsyncadd [#allocation3], 4294967040 }
 0x1a7   :  { %200 = vsyncpa [#allocation3], 1 }

</bundles_post_ra>
